<compile_context>
chip_gen: v6e
topology: v6e:2x2x1
jax: 0.10.0
libtpu: 0.0.40
codegen_flags: <defaults>
</compile_context>

<pallas_src>
import functools

import jax
import jax.numpy as jnp
from jax.experimental import pallas as pl
from jax.experimental.pallas import tpu as pltpu

BN_EPS = 1e-3
ACT_DTYPE = jnp.bfloat16          # storage dtype of the hidden activation
VMEM_LIMIT = 32 * 1024 * 1024     # scoped VMEM limit, safe on v5e/v6e/v7x


def _round_up(x, m):
    return -(-x // m) * m


def _largest_divisor(n, cap, multiple=1):
    """Largest d <= cap with n % d == 0 and d % multiple == 0 (0 if none)."""
    for d in range(min(cap, n), 0, -1):
        if n % d == 0 and d % multiple == 0:
            return d
    return 0


# ---------------------------------------------------------------------------
# Kernel 1: 1x1 conv (matmul over channels) + folded BN
#           (+ optional fused SE channel scale) (+ optional ReLU)
#           (+ optional fused residual add)
# ---------------------------------------------------------------------------
def _conv1x1_bn_kernel(*refs, relu, has_se, has_res):
    it = iter(refs)
    x_ref = next(it)                       # (1, tm, Cin)   bf16 (or f32)
    w_ref = next(it)                       # (Cin, Cout)    bf16 (pre-cast)
    s_ref = next(it)                       # (1, Cout)      f32
    b_ref = next(it)                       # (1, Cout)      f32
    se_ref = next(it) if has_se else None  # (1, 1, Cin)    bf16
    r_ref = next(it) if has_res else None  # (1, tm, Cout)  f32
    o_ref = next(it)                       # (1, tm, Cout)

    x = x_ref[0]
    if x.dtype != jnp.bfloat16:
        x = x.astype(jnp.bfloat16)
    if has_se:
        x = x * se_ref[0]                  # SE scale applied in bf16
    acc = jnp.dot(x, w_ref[...], preferred_element_type=jnp.float32)  # MXU
    acc = acc * s_ref[...] + b_ref[...]    # folded BN (f32 epilogue)
    if relu:
        acc = jnp.maximum(acc, 0.0)
    if has_res:
        acc = acc + r_ref[0].astype(jnp.float32)
    o_ref[0] = acc.astype(o_ref.dtype)


def conv1x1_bn(x3d, w, scale, bias, *, relu, se_scale=None, residual=None,
               out_dtype=None, tm_max=512, vmem_row_budget=3 << 20):
    """x3d: (N, R, Cin); w: (Cin, Cout); scale/bias: (1, Cout);
    se_scale: (N, Cin) or None; residual: (N, R, Cout) or None."""
    n, r, cin = x3d.shape
    cout = w.shape[1]
    out_dtype = x3d.dtype if out_dtype is None else out_dtype
    has_se = se_scale is not None
    has_res = residual is not None

    # Row tile: biggest divisor of R (multiple of 8) under the VMEM byte budget
    # -> no row padding / output slice copies in the common case.
    row_bytes = (cin * jnp.dtype(x3d.dtype).itemsize
                 + cout * jnp.dtype(out_dtype).itemsize)
    if has_res:
        row_bytes += cout * jnp.dtype(residual.dtype).itemsize
    cap = int(max(8, min(tm_max, vmem_row_budget // max(row_bytes, 1))))
    if r <= cap:
        tm, r_pad = r, r
    else:
        tm = _largest_divisor(r, cap, multiple=8)
        if tm:
            r_pad = r
        else:                                   # fallback: pad rows
            tm = max(8, cap - cap % 8)
            r_pad = _round_up(r, tm)

    def pad_rows(a):
        return a if a.shape[1] == r_pad else jnp.pad(
            a, ((0, 0), (0, r_pad - a.shape[1]), (0, 0)))

    in_specs = [
        pl.BlockSpec((1, tm, cin), lambda b, i: (b, i, 0)),
        pl.BlockSpec((cin, cout), lambda b, i: (0, 0)),
        pl.BlockSpec((1, cout), lambda b, i: (0, 0)),
        pl.BlockSpec((1, cout), lambda b, i: (0, 0)),
    ]
    args = [pad_rows(x3d),
            w.astype(jnp.bfloat16),             # weight pre-cast in the wrapper
            scale.astype(jnp.float32), bias.astype(jnp.float32)]
    if has_se:
        in_specs.append(pl.BlockSpec((1, 1, cin), lambda b, i: (b, 0, 0)))
        args.append(se_scale.reshape(n, 1, cin).astype(jnp.bfloat16))
    if has_res:
        in_specs.append(pl.BlockSpec((1, tm, cout), lambda b, i: (b, i, 0)))
        args.append(pad_rows(residual))

    kernel = functools.partial(_conv1x1_bn_kernel, relu=relu,
                               has_se=has_se, has_res=has_res)
    out = pl.pallas_call(
        kernel,
        out_shape=jax.ShapeDtypeStruct((n, r_pad, cout), out_dtype),
        grid=(n, r_pad // tm),
        in_specs=in_specs,
        out_specs=pl.BlockSpec((1, tm, cout), lambda b, i: (b, i, 0)),
        compiler_params=pltpu.CompilerParams(
            dimension_semantics=("parallel", "parallel"),
            vmem_limit_bytes=VMEM_LIMIT),
    )(*args)
    return out[:, :r, :] if r_pad != r else out


# ---------------------------------------------------------------------------
# Kernel 2: depthwise KxK conv (stride via phase decomposition, row-tiled with
#           halo) + folded BN + ReLU + fused global-average-pool accumulator
#           (SE squeeze) as a side output.
# ---------------------------------------------------------------------------
def _dw_bn_relu_pool_kernel(x_ref, w_ref, s_ref, b_ref, y_ref, pool_ref,
                            *, k, stride, tr, tr_in, ow):
    # x_ref: (1, 1, n_phases*tr_in, Pw, tc) -- halo'd, phase-decomposed window.
    tc = x_ref.shape[-1]
    xw = x_ref[0, 0]                              # (n_phases*tr_in, Pw, tc)
    wv = w_ref[...]                               # (k*k, tc), bf16, loaded once

    acc = jnp.zeros((tr, ow, tc), jnp.float32)
    for kw in range(k):
        q, dw = kw % stride, kw // stride
        for p in range(stride):
            ph = p * stride + q
            plane = xw[ph * tr_in:(ph + 1) * tr_in]
            col = plane[:, dw:dw + ow, :]         # column shift hoisted across kh
            for kh in range(p, k, stride):
                dh = kh // stride
                acc = acc + col[dh:dh + tr] * wv[kh * k + kw]

    y = acc * s_ref[0] + b_ref[0]                 # folded BN (f32)
    y = jnp.maximum(y, 0.0)                       # ReLU
    y_ref[0] = y.astype(y_ref.dtype)

    # SE squeeze: global-sum accumulator across the (arbitrary) row axis.
    @pl.when(pl.program_id(2) == 0)
    def _():
        pool_ref[...] = jnp.zeros_like(pool_ref)
    pool_ref[...] += jnp.sum(y, axis=(0, 1)).reshape(1, 1, tc)


def depthwise_bn_relu_pool(x_nhwc, w_taps, scale, bias, *, kernel_size, stride,
                           out_dtype=ACT_DTYPE, max_row_tile=None,
                           vmem_budget=4 << 20):
    """Returns (y: (N, OH, OW, C) out_dtype, pooled_mean: (N, C) f32)."""
    n, h, w, c = x_nhwc.shape
    k, s = kernel_size, stride
    oh, ow = -(-h // s), -(-w // s)
    halo = (k - 1) // s
    ph_rows, ph_cols = oh + halo, ow + halo
    n_phases = s * s

    # SamePadConv2d padding (dilation = 1) -- wrapper glue (bf16 storage).
    pad_h = max((oh - 1) * s + k - h, 0)
    pad_w = max((ow - 1) * s + k - w, 0)
    x_p = jnp.pad(x_nhwc.astype(ACT_DTYPE),
                  ((0, 0),
                   (pad_h // 2, pad_h - pad_h // 2),
                   (pad_w // 2, pad_w - pad_w // 2),
                   (0, 0)))

    # Phase decomposition: strided conv -> dense per-phase accumulation.
    if s == 1:
        x_ph = x_p[:, None]                                 # (n, 1, Ph, Pw, c)
    else:
        phases = []
        for p in range(s):
            for q in range(s):
                xpq = x_p[:, p::s, q::s, :]
                xpq = jnp.pad(xpq, ((0, 0),
                                    (0, ph_rows - xpq.shape[1]),
                                    (0, ph_cols - xpq.shape[2]),
                                    (0, 0)))
                phases.append(xpq)
        x_ph = jnp.stack(phases, axis=1)                    # (n, s*s, Ph, Pw, c)
    # TODO(synk): fetch halo'd row windows with in-kernel manual DMA
    # (memory_space=pl.ANY + make_async_copy) so the padded / phase-decomposed
    # copy never has to be materialized in HBM.

    # Channel tiling (depthwise is channel-independent -> no halo needed).
    c_tiles = c // 128 if (c % 128 == 0 and c > 128) else 1
    tc = c // c_tiles
    # TODO(synk): pad odd channel counts to a multiple of 128 for lane-dense
    # tiles / a second parallel axis on v7x.

    # Row tiling: biggest divisor of OH whose working set fits the byte budget.
    in_bytes = jnp.dtype(ACT_DTYPE).itemsize
    out_bytes = jnp.dtype(out_dtype).itemsize
    per_row = (2 * n_phases * ph_cols * tc * in_bytes       # 2x-buffered input
               + 2 * ow * tc * out_bytes                    # 2x-buffered output
               + ow * tc * 4)                               # f32 accumulator
    cap_rows = max(1, int(vmem_budget // max(per_row, 1)))
    if max_row_tile is not None:
        cap_rows = min(cap_rows, max_row_tile)
    tr = _largest_divisor(oh, cap_rows) or oh
    row_blocks = oh // tr
    tr_in = tr + halo

    # Row windows (halo duplicated), flattened to rank-5 blocks for the kernel.
    if row_blocks == 1:
        x_blk = x_ph.reshape(n, 1, n_phases * ph_rows, ph_cols, c)
    else:
        wins = [x_ph[:, :, j * tr:j * tr + tr_in] for j in range(row_blocks)]
        x_blk = jnp.stack(wins, axis=1).reshape(
            n, row_blocks, n_phases * tr_in, ph_cols, c)

    kernel = functools.partial(_dw_bn_relu_pool_kernel, k=k, stride=s,
                               tr=tr, tr_in=tr_in, ow=ow)
    y, pooled = pl.pallas_call(
        kernel,
        out_shape=(jax.ShapeDtypeStruct((n, oh, ow, c), out_dtype),
                   jax.ShapeDtypeStruct((n, 1, c), jnp.float32)),
        grid=(n, c_tiles, row_blocks),
        in_specs=[
            pl.BlockSpec((1, 1, n_phases * tr_in, ph_cols, tc),
                         lambda b, cb, rb: (b, rb, 0, 0, cb)),
            pl.BlockSpec((k * k, tc), lambda b, cb, rb: (0, cb)),
            pl.BlockSpec((1, tc), lambda b, cb, rb: (0, cb)),
            pl.BlockSpec((1, tc), lambda b, cb, rb: (0, cb)),
        ],
        out_specs=(
            pl.BlockSpec((1, tr, ow, tc), lambda b, cb, rb: (b, rb, 0, cb)),
            pl.BlockSpec((1, 1, tc), lambda b, cb, rb: (b, 0, cb)),
        ),
        compiler_params=pltpu.CompilerParams(
            dimension_semantics=("parallel", "parallel", "arbitrary"),
            vmem_limit_bytes=VMEM_LIMIT),
    )(x_blk, w_taps.astype(jnp.bfloat16),
      scale.astype(jnp.float32), bias.astype(jnp.float32))

    return y, pooled.reshape(n, c) * (1.0 / float(oh * ow))


# ---------------------------------------------------------------------------
# Parameter init + MBConv forward (glue)
# ---------------------------------------------------------------------------
def _bn_fold(gamma, beta, mean, var, eps=BN_EPS):
    s = gamma / jnp.sqrt(var + eps)
    b = beta - mean * s
    return (s.reshape(1, -1).astype(jnp.float32),
            b.reshape(1, -1).astype(jnp.float32))


def init_mbconv_params(key, in_channels, out_channels, expand_ratio, kernel_size):
    hidden = in_channels * expand_ratio
    sq = max(1, hidden // 4)
    keys = jax.random.split(key, 10)
    p = {}
    if expand_ratio != 1:
        # torch weight (hidden, in, 1, 1) -> matrix (in, hidden)
        p["w_expand"] = 0.1 * jax.random.normal(keys[0], (in_channels, hidden), jnp.float32)
        p["bn1_gamma"] = 1.0 + 0.1 * jax.random.normal(keys[1], (hidden,), jnp.float32)
        p["bn1_beta"] = 0.1 * jax.random.normal(keys[2], (hidden,), jnp.float32)
    # torch depthwise weight (hidden, 1, K, K) -> taps (K*K, hidden)
    p["w_dw"] = 0.1 * jax.random.normal(keys[3], (kernel_size * kernel_size, hidden), jnp.float32)
    p["bn2_gamma"] = 1.0 + 0.1 * jax.random.normal(keys[4], (hidden,), jnp.float32)
    p["bn2_beta"] = 0.1 * jax.random.normal(keys[5], (hidden,), jnp.float32)
    # SE: fc1 (sq, hidden, 1, 1) -> (hidden, sq); fc2 (hidden, sq, 1, 1) -> (sq, hidden)
    p["w_se1"] = 0.1 * jax.random.normal(keys[6], (hidden, sq), jnp.float32)
    p["w_se2"] = 0.1 * jax.random.normal(keys[7], (sq, hidden), jnp.float32)
    # project: (out, hidden, 1, 1) -> (hidden, out)
    p["w_proj"] = 0.1 * jax.random.normal(keys[8], (hidden, out_channels), jnp.float32)
    p["bn3_gamma"] = 1.0 + 0.1 * jax.random.normal(keys[9], (out_channels,), jnp.float32)
    p["bn3_beta"] = jnp.zeros((out_channels,), jnp.float32)
    return p


def mbconv_forward(x_nchw, params, *, in_channels, out_channels, expand_ratio,
                   kernel_size, stride, dw_max_row_tile=None):
    use_residual = (in_channels == out_channels) and (stride == 1)
    hidden = in_channels * expand_ratio

    x = jnp.transpose(x_nchw, (0, 2, 3, 1))        # NCHW -> NHWC (boundary glue)
    n, h, w, _ = x.shape
    identity = x

    zeros_h = jnp.zeros((hidden,), jnp.float32)
    ones_h = jnp.ones((hidden,), jnp.float32)

    # expand (1x1 conv + BN + ReLU) -- Identity if expand_ratio == 1
    if expand_ratio != 1:
        s1, b1 = _bn_fold(params["bn1_gamma"], params["bn1_beta"], zeros_h, ones_h)
        out = conv1x1_bn(x.reshape(n, h * w, in_channels), params["w_expand"],
                         s1, b1, relu=True, out_dtype=ACT_DTYPE)
        out = out.reshape(n, h, w, hidden)
    else:
        out = x

    # depthwise KxK conv (SAME pad, in-kernel stride) + BN + ReLU,
    # with the SE global-average-pool fused as an accumulator side output.
    s2, b2 = _bn_fold(params["bn2_gamma"], params["bn2_beta"], zeros_h, ones_h)
    out, pooled = depthwise_bn_relu_pool(out, params["w_dw"], s2, b2,
                                         kernel_size=kernel_size, stride=stride,
                                         max_row_tile=dw_max_row_tile)

    # SE excitation: two tiny (N x C) FCs -- plain jnp glue (MXU would idle on
    # M = batch); the resulting scale is fused into the project kernel below.
    hid = jnp.maximum(pooled @ params["w_se1"], 0.0)
    se_scale = jax.nn.sigmoid(hid @ params["w_se2"])          # (n, hidden) f32

    # project (1x1 conv + BN), with SE scale and residual fused into the kernel
    nh, nw = out.shape[1], out.shape[2]
    zeros_o = jnp.zeros((out_channels,), jnp.float32)
    ones_o = jnp.ones((out_channels,), jnp.float32)
    s3, b3 = _bn_fold(params["bn3_gamma"], params["bn3_beta"], zeros_o, ones_o)
    residual = identity.reshape(n, h * w, out_channels) if use_residual else None
    out2d = conv1x1_bn(out.reshape(n, nh * nw, hidden), params["w_proj"],
                       s3, b3, relu=False, se_scale=se_scale, residual=residual,
                       out_dtype=x_nchw.dtype)
    out = out2d.reshape(n, nh, nw, out_channels)

    return jnp.transpose(out, (0, 3, 1, 2))        # NHWC -> NCHW


if __name__ == "__main__":
    key = jax.random.PRNGKey(0)
    kx, kp = jax.random.split(key)

    N, C_IN, H, W = 2, 4, 16, 16
    C_OUT, EXPAND, KSZ, STRIDE = 4, 4, 3, 1        # use_residual = True

    x = jax.random.normal(kx, (N, C_IN, H, W), jnp.float32)
    params = init_mbconv_params(kp, C_IN, C_OUT, EXPAND, KSZ)

    # dw_max_row_tile=8 exercises the row-tiled depthwise + pooled accumulator
    # path (2 row blocks of 8 rows) at this small test shape.
    out = mbconv_forward(x, params, in_channels=C_IN, out_channels=C_OUT,
                         expand_ratio=EXPAND, kernel_size=KSZ, stride=STRIDE,
                         dw_max_row_tile=8)
    out = jax.block_until_ready(out)

    assert out.shape == (N, C_OUT, H, W), out.shape
    assert bool(jnp.all(jnp.isfinite(out)))
    print("KERNEL_OK")
</pallas_src>

<mosaic_0001>
module attributes {stable_mosaic.version = 11 : i64} {
  func.func @_conv1x1_bn_kernel(%arg0: i32, %arg1: i32, %arg2: memref<1x256x4xf32, #tpu.memory_space<vmem>>, %arg3: memref<4x16xbf16, #tpu.memory_space<vmem>>, %arg4: memref<1x16xf32, #tpu.memory_space<vmem>>, %arg5: memref<1x16xf32, #tpu.memory_space<vmem>>, %arg6: memref<1x256x16xbf16, #tpu.memory_space<vmem>>) attributes {dimension_semantics = [#tpu.dimension_semantics<parallel>, #tpu.dimension_semantics<parallel>], iteration_bounds = array<i64: 2, 1>, scalar_prefetch = 0 : i64, scratch_operands = 0 : i64, tpu.core_type = #tpu.core_type<tc>, window_params = [{transform_indices = @transform_0, window_bounds = array<i64: 1, 256, 4>}, {pipeline_mode = #tpu.pipeline_mode<synchronous>, transform_indices = @transform_1, window_bounds = array<i64: 4, 16>}, {pipeline_mode = #tpu.pipeline_mode<synchronous>, transform_indices = @transform_2, window_bounds = array<i64: 1, 16>}, {pipeline_mode = #tpu.pipeline_mode<synchronous>, transform_indices = @transform_3, window_bounds = array<i64: 1, 16>}, {transform_indices = @transform_4, window_bounds = array<i64: 1, 256, 16>}]} {
    %c0 = arith.constant 0 : index
    %c0_0 = arith.constant 0 : index
    %c0_1 = arith.constant 0 : index
    %0 = vector.load %arg2[%c0, %c0_0, %c0_1] : memref<1x256x4xf32, #tpu.memory_space<vmem>>, vector<1x256x4xf32>
    %1 = vector.shape_cast %0 : vector<1x256x4xf32> to vector<256x4xf32>
    %2 = arith.truncf %1 : vector<256x4xf32> to vector<256x4xbf16>
    %c0_2 = arith.constant 0 : index
    %c0_3 = arith.constant 0 : index
    %3 = vector.load %arg3[%c0_2, %c0_3] : memref<4x16xbf16, #tpu.memory_space<vmem>>, vector<4x16xbf16>
    %cst = arith.constant dense<0.000000e+00> : vector<256x16xf32>
    %4 = tpu.matmul %2, %3, %cst {dimension_numbers = #tpu.dot_dimension_numbers<[1], [0], [0], [1], [0, 0, 1, 1], [], []>} : vector<256x4xbf16>, vector<4x16xbf16>, vector<256x16xf32> -> vector<256x16xf32>
    %c0_4 = arith.constant 0 : index
    %c0_5 = arith.constant 0 : index
    %5 = vector.load %arg4[%c0_4, %c0_5] : memref<1x16xf32, #tpu.memory_space<vmem>>, vector<1x16xf32>
    %6 = vector.broadcast %5 : vector<1x16xf32> to vector<256x16xf32>
    %7 = arith.mulf %4, %6 : vector<256x16xf32>
    %c0_6 = arith.constant 0 : index
    %c0_7 = arith.constant 0 : index
    %8 = vector.load %arg5[%c0_6, %c0_7] : memref<1x16xf32, #tpu.memory_space<vmem>>, vector<1x16xf32>
    %9 = vector.broadcast %8 : vector<1x16xf32> to vector<256x16xf32>
    %10 = arith.addf %7, %9 : vector<256x16xf32>
    %cst_8 = arith.constant 0.000000e+00 : f32
    %11 = vector.broadcast %cst_8 : f32 to vector<256x16xf32>
    %12 = arith.maximumf %10, %11 : vector<256x16xf32>
    %13 = arith.truncf %12 : vector<256x16xf32> to vector<256x16xbf16>
    %c0_9 = arith.constant 0 : index
    %c0_10 = arith.constant 0 : index
    %c0_11 = arith.constant 0 : index
    %14 = vector.load %arg6[%c0_9, %c0_10, %c0_11] : memref<1x256x16xbf16, #tpu.memory_space<vmem>>, vector<1x256x16xbf16>
    %15 = vector.shape_cast %14 : vector<1x256x16xbf16> to vector<256x16xbf16>
    %16 = vector.shape_cast %13 : vector<256x16xbf16> to vector<1x256x16xbf16>
    tpu.vector_store %arg6[%c0_9, %c0_10, %c0_11], %16 {strides = array<i32>} : memref<1x256x16xbf16, #tpu.memory_space<vmem>>, vector<1x256x16xbf16>,
    return
  }
  func.func @transform_0(%arg0: i32, %arg1: i32) -> (i32, i32, i32) {
    %c0_i32 = arith.constant 0 : i32
    %c0_i32_0 = arith.constant 0 : i32
    return %arg0, %arg1, %c0_i32 : i32, i32, i32
  }
  func.func @transform_1(%arg0: i32, %arg1: i32) -> (i32, i32) {
    %c0_i32 = arith.constant 0 : i32
    %c0_i32_0 = arith.constant 0 : i32
    %c0_i32_1 = arith.constant 0 : i32
    return %c0_i32, %c0_i32_0 : i32, i32
  }
  func.func @transform_2(%arg0: i32, %arg1: i32) -> (i32, i32) {
    %c0_i32 = arith.constant 0 : i32
    %c0_i32_0 = arith.constant 0 : i32
    %c0_i32_1 = arith.constant 0 : i32
    return %c0_i32, %c0_i32_0 : i32, i32
  }
  func.func @transform_3(%arg0: i32, %arg1: i32) -> (i32, i32) {
    %c0_i32 = arith.constant 0 : i32
    %c0_i32_0 = arith.constant 0 : i32
    %c0_i32_1 = arith.constant 0 : i32
    return %c0_i32, %c0_i32_0 : i32, i32
  }
  func.func @transform_4(%arg0: i32, %arg1: i32) -> (i32, i32, i32) {
    %c0_i32 = arith.constant 0 : i32
    %c0_i32_0 = arith.constant 0 : i32
    return %arg0, %arg1, %c0_i32 : i32, i32, i32
  }
}

</mosaic_0001>

<bundles_post_ra>
// kernel: tpu_custom_call.1
= control target key start
LH: loop header
LB: loop body
LE: loop exit
PB: predicated region body
PF: predicated region fallthrough
CT: control target
= control target key end

     0   :  { %s1082_s15 = smov 0   ;;  %s1084_s16 = smov 0   ;;  %s1312_s0 = inlined_call_operand.vmem [shape: f32[2,256,4], index: 0, kind: input, shape index: {}]   ;;  %s1313_s1 = inlined_call_operand.vmem [shape: bf16[4,16], index: 1, kind: input, shape index: {}]   ;;  %s1314_s2 = inlined_call_operand.vmem [shape: f32[1,16], index: 2, kind: input, shape index: {}]   ;;  %s1315_s3 = inlined_call_operand.vmem [shape: f32[1,16], index: 3, kind: input, shape index: {}]   ;;  %s1316_s4 = inlined_call_operand.vmem [shape: bf16[2,256,16], index: 4, kind: output, shape index: {}]  }
   0x1   :  { %s1086_s17 = smov 0  }
   0x2 LB: > { %s26_s18 = sadd.s32 1, %s1051_s16  ;;  %p863_p0 = scmp.ge.s32.totalorder %s1055_s17, 1  ;;  %s1055_s17 = sphi %s1086_s17, %s14_s17   ;;  %s1051_s16 = sphi %s1084_s16, %s1318_s16   ;;  %s1047_s15 = sphi %s1082_s15, %s1317_s15  }
   0x3   : > { %p28_p1 = scmp.ge.s32.totalorder %s26_s18, 2  ;;  %p183_p2 = scmp.lt.s32.totalorder %s1055_s17, 3 }
   0x5   : > { %s1320_s18 = smov (%p28_p1, %s26_s18), 0  ;;  %p184_p3 = pnand %p863_p0, %p183_p2 }
   0x6   : > { %p218_p4 = scmp.lt.s32.totalorder (!%p184_p3), %s1047_s15, 1 }
   0x7   : > { %187 = sbr.rel (%p184_p3) target bundleno = 252 (0xfc), region = 36 }
   0xc   : > { %v286_v0 = vld [vmem:[%s1313_s1] sm:$0x3]  ;;  %vm336_vm0 = vcmask 1041408   ;;  %s1322_s15 = smov (!%p218_p4, %s1047_s15), 1  ;;  %vm287_vm1 = vcmask 31744   ;;  %vm739_vm2 = vcmask 125952  }
   0xd   : > { %1007 = vmatprep.subr.msk.bf16.mxu0 %vm336_vm0, %v286_v0  ;;  %1008 = vmatprep.subr.msk.bf16.mxu1 %vm336_vm0, %v286_v0  ;;  %v338_v1 = vsel %vm336_vm0, %v286_v0, 0  ;;  %s920_s21 = sshll.u32 %s1322_s15, 8  ;;  %v1162_v50 = vld [vmem:[%s1314_s2] ss:$0 sm:$0xff]  ;;  %s921_s29 = sshll.u32 %s1322_s15, 7 }
   0xe   : > { %972 = vmatpush3.bf16.msra.mxu0 %v338_v1  ;;  %1006 = vmatpush3.bf16.msra.mxu1 %v338_v1  ;;  %s1109_s24 = scalar_lea.vmem %s1312_s0, %s920_s21  ;;  %v1167_v52 = vld [vmem:[%s1315_s3] ss:$0 sm:$0xff]  ;;  %s1181_s6 = scalar_lea.vmem %s1316_s4, %s921_s29 }
   0xf   : > { %v238_v2 = vld [vmem:[%s1109_s24] sm:$0xff]  ;;  %v239_v3 = vld [vmem:[%s1109_s24 + $0x8] sm:$0xff]  ;;  %v240_v7 = vld [vmem:[%s1109_s24 + $0x10] sm:$0xff] }
  0x10   : > { %v254_v4 = vld [vmem:[%s1109_s24 + $0x80] sm:$0xff]  ;;  %v270_v5 = vpack.c.bf16 %v239_v3, %v238_v2  ;;  %v255_v6 = vld [vmem:[%s1109_s24 + $0x88] sm:$0xff]  ;;  %v241_v8 = vld [vmem:[%s1109_s24 + $0x18] sm:$0xff] }
  0x11   : > { %v278_v9 = vpack.c.bf16 %v255_v6, %v254_v4  ;;  %v271_v10 = vpack.c.bf16 %v241_v8, %v240_v7  ;;  %v256_v11 = vld [vmem:[%s1109_s24 + $0x90] sm:$0xff]  ;;  %v257_v12 = vld [vmem:[%s1109_s24 + $0x98] sm:$0xff]  ;;  %v242_v13 = vld [vmem:[%s1109_s24 + $0x20] sm:$0xff] }
  0x12   : > { %973 = vmatprep.mubr.msk.bf16.mxu0 %vm287_vm1, %v270_v5  ;;  %v279_v14 = vpack.c.bf16 %v257_v12, %v256_v11  ;;  %v243_v15 = vld [vmem:[%s1109_s24 + $0x28] sm:$0xff]  ;;  %v258_v16 = vld [vmem:[%s1109_s24 + $0xa0] sm:$0xff]  ;;  %v244_v20 = vld [vmem:[%s1109_s24 + $0x30] sm:$0xff] }
  0x13   : > { %v259_v17 = vld [vmem:[%s1109_s24 + $0xa8] sm:$0xff]  ;;  %989 = vmatprep.mubr.msk.bf16.mxu1 %vm287_vm1, %v278_v9  ;;  %974 = vmatmul.mubr.msk.bf16.vlgmr.msra.gmra.mxu0 %vm287_vm1, %v271_v10  ;;  %v272_v18 = vpack.c.bf16 %v243_v15, %v242_v13  ;;  %v245_v21 = vld [vmem:[%s1109_s24 + $0x38] sm:$0xff]  ;;  %v260_v22 = vld [vmem:[%s1109_s24 + $0xb0] sm:$0xff] }
  0x14   : > { %v280_v19 = vpack.c.bf16 %v259_v17, %v258_v16  ;;  %990 = vmatmul.mubr.msk.bf16.vlgmr.msra.gmra.mxu1 %vm287_vm1, %v279_v14  ;;  %v261_v23 = vld [vmem:[%s1109_s24 + $0xb8] sm:$0xff]  ;;  %v246_v24 = vld [vmem:[%s1109_s24 + $0x40] sm:$0xff]  ;;  %v247_v25 = vld [vmem:[%s1109_s24 + $0x48] sm:$0xff]  ;;  %v273_v28 = vpack.c.bf16 %v245_v21, %v244_v20 }
  0x15   : > { %977 = vmatprep.mubr.msk.bf16.mxu0 %vm287_vm1, %v272_v18  ;;  %v262_v26 = vld [vmem:[%s1109_s24 + $0xc0] sm:$0xff]  ;;  %v263_v27 = vld [vmem:[%s1109_s24 + $0xc8] sm:$0xff]  ;;  %v281_v29 = vpack.c.bf16 %v261_v23, %v260_v22  ;;  %v274_v30 = vpack.c.bf16 %v247_v25, %v246_v24  ;;  %v248_v32 = vld [vmem:[%s1109_s24 + $0x50] sm:$0xff] }
  0x16   : > { %993 = vmatprep.mubr.msk.bf16.mxu1 %vm287_vm1, %v280_v19  ;;  %v282_v31 = vpack.c.bf16 %v263_v27, %v262_v26  ;;  %v249_v33 = vld [vmem:[%s1109_s24 + $0x58] sm:$0xff]  ;;  %v264_v34 = vld [vmem:[%s1109_s24 + $0xd0] sm:$0xff]  ;;  %v250_v36 = vld [vmem:[%s1109_s24 + $0x60] sm:$0xff] }
  0x17   : > { %v265_v35 = vld [vmem:[%s1109_s24 + $0xd8] sm:$0xff]  ;;  %v251_v37 = vld [vmem:[%s1109_s24 + $0x68] sm:$0xff]  ;;  %v266_v38 = vld [vmem:[%s1109_s24 + $0xe0] sm:$0xff]  ;;  %v275_v40 = vpack.c.bf16 %v249_v33, %v248_v32 }
  0x18   : > { %v267_v39 = vld [vmem:[%s1109_s24 + $0xe8] sm:$0xff]  ;;  %v283_v41 = vpack.c.bf16 %v265_v35, %v264_v34  ;;  %v276_v42 = vpack.c.bf16 %v251_v37, %v250_v36  ;;  %v252_v44 = vld [vmem:[%s1109_s24 + $0x70] sm:$0xff]  ;;  %v253_v45 = vld [vmem:[%s1109_s24 + $0x78] sm:$0xff] }
  0x19   : > { %v284_v43 = vpack.c.bf16 %v267_v39, %v266_v38  ;;  %v268_v46 = vld [vmem:[%s1109_s24 + $0xf0] sm:$0xff]  ;;  %v269_v47 = vld [vmem:[%s1109_s24 + $0xf8] sm:$0xff]  ;;  %v277_v48 = vpack.c.bf16 %v253_v45, %v252_v44 }
  0x1a   : > { %v285_v49 = vpack.c.bf16 %v269_v47, %v268_v46 }
  0x1b   : > { %978 = vmatmul.mubr.msk.bf16.gmra.mxu0 %vm287_vm1, %v273_v28 }
  0x1c   : > { %994 = vmatmul.mubr.msk.bf16.gmra.mxu1 %vm287_vm1, %v281_v29  ;;  %981 = vmatprep.mubr.msk.bf16.mxu0 %vm287_vm1, %v274_v30 }
  0x1d   : > { %997 = vmatprep.mubr.msk.bf16.mxu1 %vm287_vm1, %v282_v31 }
  0x23   : > { %982 = vmatmul.mubr.msk.bf16.gmra.mxu0 %vm287_vm1, %v275_v40 }
  0x24   : > { %998 = vmatmul.mubr.msk.bf16.gmra.mxu1 %vm287_vm1, %v283_v41  ;;  %985 = vmatprep.mubr.msk.bf16.mxu0 %vm287_vm1, %v276_v42 }
  0x25   : > { %1001 = vmatprep.mubr.msk.bf16.mxu1 %vm287_vm1, %v284_v43 }
  0x2b   : > { %986 = vmatmul.mubr.msk.bf16.gmra.mxu0 %vm287_vm1, %v277_v48 }
  0x2c   : > { %1002 = vmatmul.mubr.msk.bf16.gmra.mxu1 %vm287_vm1, %v285_v49 }
  0xd3   : > { %v975_v51 = vpop.f32.mrf.mxu0 }
  0xd4   : > { %v510_v53 = vmul.f32 %v975_v51, %v1162_v50  ;;  %v991_v54 = vpop.f32.mrf.mxu1 }
  0xd5   : > { %v526_v55 = vmul.f32 %v991_v54, %v1162_v50  ;;  %v374_v56 = vpop.f32.mrf.mxu0 }
  0xd6   : > { %v549_v57 = vadd.f32 %v1167_v52, %v510_v53  ;;  %v508_v58 = vmul.f32 %v1162_v50, %v374_v56  ;;  %v438_v59 = vpop.f32.mrf.mxu1 }
  0xd7   : > { %v565_v60 = vadd.f32 %v1167_v52, %v526_v55  ;;  %v524_v61 = vmul.f32 %v1162_v50, %v438_v59  ;;  %v976_v62 = vpop.f32.mrf.mxu0 }
  0xd8   : > { %v581_v63 = vmax.f32 %v549_v57, 0.0  ;;  %v547_v0 = vadd.f32 %v1167_v52, %v508_v58  ;;  %v511_v1 = vmul.f32 %v976_v62, %v1162_v50  ;;  %v992_v2 = vpop.f32.mrf.mxu1 }
  0xd9   : > { %v597_v3 = vmax.f32 %v565_v60, 0.0  ;;  %v563_v4 = vadd.f32 %v1167_v52, %v524_v61  ;;  %v527_v5 = vmul.f32 %v992_v2, %v1162_v50  ;;  %v377_v6 = vpop.f32.mrf.mxu0 }
  0xda   : > { %v924_v7 = vpack.c.bf16 %v581_v63, %v581_v63  ;;  %v579_v8 = vmax.f32 %v547_v0, 0.0  ;;  %v550_v9 = vadd.f32 %v1167_v52, %v511_v1  ;;  %v509_v10 = vmul.f32 %v1162_v50, %v377_v6  ;;  %v441_v11 = vpop.f32.mrf.mxu1 }
  0xdb   : > { %v940_v12 = vpack.c.bf16 %v597_v3, %v597_v3  ;;  %v595_v13 = vmax.f32 %v563_v4, 0.0  ;;  %v566_v14 = vadd.f32 %v1167_v52, %v527_v5  ;;  %v525_v15 = vmul.f32 %v1162_v50, %v441_v11  ;;  %v979_v16 = vpop.f32.mrf.mxu0 }
  0xdc   : > { %742 = vst.msk [vmem:[%s1181_s6 + $0x8] sm:$0xf] %vm739_vm2, %v924_v7  ;;  %v922_v17 = vpack.c.bf16 %v579_v8, %v579_v8  ;;  %v582_v18 = vmax.f32 %v550_v9, 0.0  ;;  %v548_v19 = vadd.f32 %v1167_v52, %v509_v10  ;;  %v514_v20 = vmul.f32 %v979_v16, %v1162_v50  ;;  %v995_v21 = vpop.f32.mrf.mxu1 }
  0xdd   : > { %758 = vst.msk [vmem:[%s1181_s6 + $0x48] sm:$0xf] %vm739_vm2, %v940_v12  ;;  %v938_v22 = vpack.c.bf16 %v595_v13, %v595_v13  ;;  %v598_v23 = vmax.f32 %v566_v14, 0.0  ;;  %v564_v24 = vadd.f32 %v1167_v52, %v525_v15  ;;  %v530_v25 = vmul.f32 %v995_v21, %v1162_v50  ;;  %v390_v26 = vpop.f32.mrf.mxu0 }
  0xde   : > { %740 = vst.msk [vmem:[%s1181_s6] sm:$0xf] %vm739_vm2, %v922_v17  ;;  %v925_v27 = vpack.c.bf16 %v582_v18, %v582_v18  ;;  %v580_v28 = vmax.f32 %v548_v19, 0.0  ;;  %v553_v29 = vadd.f32 %v1167_v52, %v514_v20  ;;  %v512_v30 = vmul.f32 %v1162_v50, %v390_v26  ;;  %v454_v31 = vpop.f32.mrf.mxu1 }
  0xdf   : > { %756 = vst.msk [vmem:[%s1181_s6 + $0x40] sm:$0xf] %vm739_vm2, %v938_v22  ;;  %v941_v32 = vpack.c.bf16 %v598_v23, %v598_v23  ;;  %v596_v33 = vmax.f32 %v564_v24, 0.0  ;;  %v569_v34 = vadd.f32 %v1167_v52, %v530_v25  ;;  %v528_v35 = vmul.f32 %v1162_v50, %v454_v31  ;;  %v980_v36 = vpop.f32.mrf.mxu0 }
  0xe0   : > { %743 = vst.msk [vmem:[%s1181_s6 + $0xc] sm:$0xf] %vm739_vm2, %v925_v27  ;;  %v923_v37 = vpack.c.bf16 %v580_v28, %v580_v28  ;;  %v585_v38 = vmax.f32 %v553_v29, 0.0  ;;  %v551_v39 = vadd.f32 %v1167_v52, %v512_v30  ;;  %v515_v40 = vmul.f32 %v980_v36, %v1162_v50  ;;  %v996_v41 = vpop.f32.mrf.mxu1 }
  0xe1   : > { %759 = vst.msk [vmem:[%s1181_s6 + $0x4c] sm:$0xf] %vm739_vm2, %v941_v32  ;;  %v939_v42 = vpack.c.bf16 %v596_v33, %v596_v33  ;;  %v601_v43 = vmax.f32 %v569_v34, 0.0  ;;  %v567_v44 = vadd.f32 %v1167_v52, %v528_v35  ;;  %v531_v45 = vmul.f32 %v996_v41, %v1162_v50  ;;  %v393_v46 = vpop.f32.mrf.mxu0 }
  0xe2   : > { %741 = vst.msk [vmem:[%s1181_s6 + $0x4] sm:$0xf] %vm739_vm2, %v923_v37  ;;  %v928_v47 = vpack.c.bf16 %v585_v38, %v585_v38  ;;  %v583_v48 = vmax.f32 %v551_v39, 0.0  ;;  %v554_v49 = vadd.f32 %v1167_v52, %v515_v40  ;;  %v513_v51 = vmul.f32 %v1162_v50, %v393_v46  ;;  %v457_v53 = vpop.f32.mrf.mxu1 }
  0xe3   : > { %757 = vst.msk [vmem:[%s1181_s6 + $0x44] sm:$0xf] %vm739_vm2, %v939_v42  ;;  %v944_v54 = vpack.c.bf16 %v601_v43, %v601_v43  ;;  %v599_v55 = vmax.f32 %v567_v44, 0.0  ;;  %v570_v56 = vadd.f32 %v1167_v52, %v531_v45  ;;  %v529_v57 = vmul.f32 %v1162_v50, %v457_v53  ;;  %v983_v58 = vpop.f32.mrf.mxu0 }
  0xe4   : > { %746 = vst.msk [vmem:[%s1181_s6 + $0x18] sm:$0xf] %vm739_vm2, %v928_v47  ;;  %v926_v59 = vpack.c.bf16 %v583_v48, %v583_v48  ;;  %v586_v60 = vmax.f32 %v554_v49, 0.0  ;;  %v552_v61 = vadd.f32 %v1167_v52, %v513_v51  ;;  %v518_v62 = vmul.f32 %v983_v58, %v1162_v50  ;;  %v999_v63 = vpop.f32.mrf.mxu1 }
  0xe5   : > { %762 = vst.msk [vmem:[%s1181_s6 + $0x58] sm:$0xf] %vm739_vm2, %v944_v54  ;;  %v942_v0 = vpack.c.bf16 %v599_v55, %v599_v55  ;;  %v602_v1 = vmax.f32 %v570_v56, 0.0  ;;  %v568_v2 = vadd.f32 %v1167_v52, %v529_v57  ;;  %v534_v3 = vmul.f32 %v999_v63, %v1162_v50  ;;  %v406_v4 = vpop.f32.mrf.mxu0 }
  0xe6   : > { %744 = vst.msk [vmem:[%s1181_s6 + $0x10] sm:$0xf] %vm739_vm2, %v926_v59  ;;  %v929_v5 = vpack.c.bf16 %v586_v60, %v586_v60  ;;  %v584_v6 = vmax.f32 %v552_v61, 0.0  ;;  %v557_v7 = vadd.f32 %v1167_v52, %v518_v62  ;;  %v516_v8 = vmul.f32 %v1162_v50, %v406_v4  ;;  %v470_v9 = vpop.f32.mrf.mxu1 }
  0xe7   : > { %760 = vst.msk [vmem:[%s1181_s6 + $0x50] sm:$0xf] %vm739_vm2, %v942_v0  ;;  %v945_v10 = vpack.c.bf16 %v602_v1, %v602_v1  ;;  %v600_v11 = vmax.f32 %v568_v2, 0.0  ;;  %v573_v12 = vadd.f32 %v1167_v52, %v534_v3  ;;  %v532_v13 = vmul.f32 %v1162_v50, %v470_v9  ;;  %v984_v14 = vpop.f32.mrf.mxu0 }
  0xe8   : > { %747 = vst.msk [vmem:[%s1181_s6 + $0x1c] sm:$0xf] %vm739_vm2, %v929_v5  ;;  %v927_v15 = vpack.c.bf16 %v584_v6, %v584_v6  ;;  %v589_v16 = vmax.f32 %v557_v7, 0.0  ;;  %v555_v17 = vadd.f32 %v1167_v52, %v516_v8  ;;  %v519_v18 = vmul.f32 %v984_v14, %v1162_v50  ;;  %v1000_v19 = vpop.f32.mrf.mxu1 }
  0xe9   : > { %763 = vst.msk [vmem:[%s1181_s6 + $0x5c] sm:$0xf] %vm739_vm2, %v945_v10  ;;  %v943_v20 = vpack.c.bf16 %v600_v11, %v600_v11  ;;  %v605_v21 = vmax.f32 %v573_v12, 0.0  ;;  %v571_v22 = vadd.f32 %v1167_v52, %v532_v13  ;;  %v535_v23 = vmul.f32 %v1000_v19, %v1162_v50  ;;  %v409_v24 = vpop.f32.mrf.mxu0 }
  0xea   : > { %745 = vst.msk [vmem:[%s1181_s6 + $0x14] sm:$0xf] %vm739_vm2, %v927_v15  ;;  %v932_v25 = vpack.c.bf16 %v589_v16, %v589_v16  ;;  %v587_v26 = vmax.f32 %v555_v17, 0.0  ;;  %v558_v27 = vadd.f32 %v1167_v52, %v519_v18  ;;  %v517_v28 = vmul.f32 %v1162_v50, %v409_v24  ;;  %v473_v29 = vpop.f32.mrf.mxu1 }
  0xeb   : > { %761 = vst.msk [vmem:[%s1181_s6 + $0x54] sm:$0xf] %vm739_vm2, %v943_v20  ;;  %v948_v30 = vpack.c.bf16 %v605_v21, %v605_v21  ;;  %v603_v31 = vmax.f32 %v571_v22, 0.0  ;;  %v574_v32 = vadd.f32 %v1167_v52, %v535_v23  ;;  %v533_v33 = vmul.f32 %v1162_v50, %v473_v29  ;;  %v987_v34 = vpop.f32.mrf.mxu0 }
  0xec   : > { %750 = vst.msk [vmem:[%s1181_s6 + $0x28] sm:$0xf] %vm739_vm2, %v932_v25  ;;  %v930_v35 = vpack.c.bf16 %v587_v26, %v587_v26  ;;  %v590_v36 = vmax.f32 %v558_v27, 0.0  ;;  %v556_v37 = vadd.f32 %v1167_v52, %v517_v28  ;;  %v522_v38 = vmul.f32 %v987_v34, %v1162_v50  ;;  %v1003_v39 = vpop.f32.mrf.mxu1 }
  0xed   : > { %766 = vst.msk [vmem:[%s1181_s6 + $0x68] sm:$0xf] %vm739_vm2, %v948_v30  ;;  %v946_v40 = vpack.c.bf16 %v603_v31, %v603_v31  ;;  %v606_v41 = vmax.f32 %v574_v32, 0.0  ;;  %v572_v42 = vadd.f32 %v1167_v52, %v533_v33  ;;  %v538_v43 = vmul.f32 %v1003_v39, %v1162_v50  ;;  %v422_v44 = vpop.f32.mrf.mxu0 }
  0xee   : > { %748 = vst.msk [vmem:[%s1181_s6 + $0x20] sm:$0xf] %vm739_vm2, %v930_v35  ;;  %v933_v45 = vpack.c.bf16 %v590_v36, %v590_v36  ;;  %v588_v46 = vmax.f32 %v556_v37, 0.0  ;;  %v561_v47 = vadd.f32 %v1167_v52, %v522_v38  ;;  %v520_v48 = vmul.f32 %v1162_v50, %v422_v44  ;;  %v486_v49 = vpop.f32.mrf.mxu1 }
  0xef   : > { %764 = vst.msk [vmem:[%s1181_s6 + $0x60] sm:$0xf] %vm739_vm2, %v946_v40  ;;  %v949_v51 = vpack.c.bf16 %v606_v41, %v606_v41  ;;  %v604_v53 = vmax.f32 %v572_v42, 0.0  ;;  %v577_v54 = vadd.f32 %v1167_v52, %v538_v43  ;;  %v536_v55 = vmul.f32 %v1162_v50, %v486_v49  ;;  %v988_v56 = vpop.f32.mrf.mxu0 }
  0xf0   : > { %751 = vst.msk [vmem:[%s1181_s6 + $0x2c] sm:$0xf] %vm739_vm2, %v933_v45  ;;  %v931_v57 = vpack.c.bf16 %v588_v46, %v588_v46  ;;  %v593_v58 = vmax.f32 %v561_v47, 0.0  ;;  %v559_v59 = vadd.f32 %v1167_v52, %v520_v48  ;;  %v523_v60 = vmul.f32 %v988_v56, %v1162_v50  ;;  %v1004_v61 = vpop.f32.mrf.mxu1 }
  0xf1   : > { %767 = vst.msk [vmem:[%s1181_s6 + $0x6c] sm:$0xf] %vm739_vm2, %v949_v51  ;;  %v947_v62 = vpack.c.bf16 %v604_v53, %v604_v53  ;;  %v609_v63 = vmax.f32 %v577_v54, 0.0  ;;  %v575_v0 = vadd.f32 %v1167_v52, %v536_v55  ;;  %v539_v1 = vmul.f32 %v1004_v61, %v1162_v50  ;;  %v425_v2 = vpop.f32.mrf.mxu0 }
  0xf2   : > { %749 = vst.msk [vmem:[%s1181_s6 + $0x24] sm:$0xf] %vm739_vm2, %v931_v57  ;;  %v936_v3 = vpack.c.bf16 %v593_v58, %v593_v58  ;;  %v591_v4 = vmax.f32 %v559_v59, 0.0  ;;  %v562_v5 = vadd.f32 %v1167_v52, %v523_v60  ;;  %v521_v6 = vmul.f32 %v1162_v50, %v425_v2  ;;  %v489_v7 = vpop.f32.mrf.mxu1 }
  0xf3   : > { %765 = vst.msk [vmem:[%s1181_s6 + $0x64] sm:$0xf] %vm739_vm2, %v947_v62  ;;  %v952_v8 = vpack.c.bf16 %v609_v63, %v609_v63  ;;  %v607_v9 = vmax.f32 %v575_v0, 0.0  ;;  %v578_v10 = vadd.f32 %v1167_v52, %v539_v1  ;;  %v537_v11 = vmul.f32 %v1162_v50, %v489_v7 }
  0xf4   : > { %754 = vst.msk [vmem:[%s1181_s6 + $0x38] sm:$0xf] %vm739_vm2, %v936_v3  ;;  %v934_v12 = vpack.c.bf16 %v591_v4, %v591_v4  ;;  %v594_v13 = vmax.f32 %v562_v5, 0.0  ;;  %v560_v14 = vadd.f32 %v1167_v52, %v521_v6 }
  0xf5   : > { %770 = vst.msk [vmem:[%s1181_s6 + $0x78] sm:$0xf] %vm739_vm2, %v952_v8  ;;  %v950_v15 = vpack.c.bf16 %v607_v9, %v607_v9  ;;  %v610_v16 = vmax.f32 %v578_v10, 0.0  ;;  %v576_v17 = vadd.f32 %v1167_v52, %v537_v11 }
  0xf6   : > { %752 = vst.msk [vmem:[%s1181_s6 + $0x30] sm:$0xf] %vm739_vm2, %v934_v12  ;;  %v937_v18 = vpack.c.bf16 %v594_v13, %v594_v13  ;;  %v592_v19 = vmax.f32 %v560_v14, 0.0 }
  0xf7   : > { %768 = vst.msk [vmem:[%s1181_s6 + $0x70] sm:$0xf] %vm739_vm2, %v950_v15  ;;  %v953_v50 = vpack.c.bf16 %v610_v16, %v610_v16  ;;  %v608_v20 = vmax.f32 %v576_v17, 0.0 }
  0xf8   : > { %755 = vst.msk [vmem:[%s1181_s6 + $0x3c] sm:$0xf] %vm739_vm2, %v937_v18  ;;  %v935_v21 = vpack.c.bf16 %v592_v19, %v592_v19 }
  0xf9   : > { %771 = vst.msk [vmem:[%s1181_s6 + $0x7c] sm:$0xf] %vm739_vm2, %v953_v50  ;;  %v951_v22 = vpack.c.bf16 %v608_v20, %v608_v20 }
  0xfa   : > { %753 = vst.msk [vmem:[%s1181_s6 + $0x34] sm:$0xf] %vm739_vm2, %v935_v21 }
  0xfb   : > { %769 = vst.msk [vmem:[%s1181_s6 + $0x74] sm:$0xf] %vm739_vm2, %v951_v22 }
  0xfc PF: > { %s14_s17 = sadd.s32 1, %s1055_s17   ;;  %s1317_s15 = smov %s1051_s16 }
  0xfd   : > { %p11_p5 = scmp.ge.s32.totalorder %s14_s17, 4   ;;  %s1318_s16 = smov %s1320_s18 }
  0xff   :  { %13 = sbr.rel (!%p11_p5) target bundleno = 2 (0x2), region = 66 }

</bundles_post_ra>
